<compile_context>
chip_gen: v7x
topology: tpu7x:2x2x1
jax: 0.10.0
libtpu: 0.0.40
codegen_flags: <defaults>
</compile_context>

<pallas_src>
import jax
import jax.numpy as jnp
from jax import lax
from jax.experimental import pallas as pl
from jax.experimental.pallas import tpu as pltpu


def _sentence_classifier_kernel(x_ref, w_ref, b_ref, o_ref):
    # tanh on the VPU/EUP in f32, then lane-contracting matmul on the MXU.
    x = jnp.tanh(x_ref[...].astype(jnp.float32))
    # x: [tile_b, H]; w: [L_pad, H] (native nn.Linear layout) -> [tile_b, L_pad]
    acc = lax.dot_general(
        x,
        w_ref[...].astype(jnp.float32),
        dimension_numbers=(((1,), (1,)), ((), ())),
        preferred_element_type=jnp.float32,
    )
    o_ref[...] = (acc + b_ref[...].astype(jnp.float32)).astype(o_ref.dtype)


def sentence_classifier_forward(feature, weight, bias, *, tile_b=None):
    """feature: [B, H]; weight: [L, H] (PyTorch nn.Linear layout); bias: [L]."""
    B, H = feature.shape
    L = weight.shape[0]
    out_dtype = feature.dtype

    # Sublane granularity: 8 rows for 32-bit, 16 for bf16 packing.
    sub = 16 if feature.dtype == jnp.bfloat16 else 8

    # Lane-dense output: pad num_lang up to a multiple of 128.
    L_pad = max(128, ((L + 127) // 128) * 128)
    w_p = jnp.pad(weight, ((0, L_pad - L), (0, 0)))          # [L_pad, H], native layout
    b_p = jnp.pad(bias, (0, L_pad - L)).reshape(1, L_pad)    # [1, L_pad]

    # Batch tiling: one big tile when the batch is small, else up to 1024-row
    # tiles (mem-bound: large tiles keep the DMA pipeline busy; multiple grid
    # steps stay "parallel" so v7x's two TensorCores both get work).
    if tile_b is None:
        tile_b = min(((B + sub - 1) // sub) * sub, 1024)
    tile_b = max(sub, ((tile_b + sub - 1) // sub) * sub)

    # Pad batch so every tile is full (padded rows are sliced off afterwards).
    B_pad = ((B + tile_b - 1) // tile_b) * tile_b
    x = feature if B_pad == B else jnp.pad(feature, ((0, B_pad - B), (0, 0)))

    grid = (B_pad // tile_b,)

    cost = pl.CostEstimate(
        flops=2 * B_pad * H * L_pad,
        transcendentals=B_pad * H,
        bytes_accessed=(B_pad * H + L_pad * H + L_pad + B_pad * L_pad) * 4,
    )

    out = pl.pallas_call(
        _sentence_classifier_kernel,
        out_shape=jax.ShapeDtypeStruct((B_pad, L_pad), out_dtype),
        grid_spec=pltpu.PrefetchScalarGridSpec(
            num_scalar_prefetch=0,
            grid=grid,
            in_specs=[
                pl.BlockSpec((tile_b, H), lambda i: (i, 0)),    # feature tile
                pl.BlockSpec((L_pad, H), lambda i: (0, 0)),     # resident weight
                pl.BlockSpec((1, L_pad), lambda i: (0, 0)),     # resident bias
            ],
            out_specs=pl.BlockSpec((tile_b, L_pad), lambda i: (i, 0)),
        ),
        compiler_params=pltpu.CompilerParams(
            dimension_semantics=("parallel",)),
        cost_estimate=cost,
    )(x, w_p, b_p)

    return out[:B, :L]


if __name__ == "__main__":
    key = jax.random.PRNGKey(0)
    k1, k2, k3 = jax.random.split(key, 3)

    # Module hyperparams: hidden_size=128, num_lang=8; batch of sentences = 16.
    B, hidden_size, num_lang = 16, 128, 8

    feature = jax.random.normal(k1, (B, hidden_size), dtype=jnp.float32)
    # Deterministic init of nn.Linear(hidden_size, num_lang) parameters.
    weight = jax.random.normal(k2, (num_lang, hidden_size), dtype=jnp.float32) * 0.05
    bias = jax.random.normal(k3, (num_lang,), dtype=jnp.float32) * 0.05

    out = sentence_classifier_forward(feature, weight, bias)
    out = jax.block_until_ready(out)

    # Reference check in plain JAX (same math as the PyTorch module).
    ref = jnp.tanh(feature) @ weight.T + bias
    assert out.shape == (B, num_lang)
    assert jnp.allclose(out, ref, atol=1e-5, rtol=1e-5)

    print("KERNEL_OK")
</pallas_src>

<mosaic_0001>
module attributes {stable_mosaic.version = 11 : i64} {
  func.func @_sentence_classifier_kernel(%arg0: i32, %arg1: memref<16x128xf32, #tpu.memory_space<vmem>>, %arg2: memref<128x128xf32, #tpu.memory_space<vmem>>, %arg3: memref<1x128xf32, #tpu.memory_space<vmem>>, %arg4: memref<16x128xf32, #tpu.memory_space<vmem>>) attributes {dimension_semantics = [#tpu.dimension_semantics<parallel>], iteration_bounds = array<i64: 1>, scalar_prefetch = 0 : i64, scratch_operands = 0 : i64, tpu.core_type = #tpu.core_type<tc>, window_params = [{transform_indices = @transform_0, window_bounds = array<i64: 16, 128>}, {pipeline_mode = #tpu.pipeline_mode<synchronous>, transform_indices = @transform_1, window_bounds = array<i64: 128, 128>}, {pipeline_mode = #tpu.pipeline_mode<synchronous>, transform_indices = @transform_2, window_bounds = array<i64: 1, 128>}, {transform_indices = @transform_3, window_bounds = array<i64: 16, 128>}]} {
    %c0 = arith.constant 0 : index
    %c0_0 = arith.constant 0 : index
    %0 = vector.load %arg1[%c0, %c0_0] : memref<16x128xf32, #tpu.memory_space<vmem>>, vector<16x128xf32>
    %1 = math.tanh %0 : vector<16x128xf32>
    %c0_1 = arith.constant 0 : index
    %c0_2 = arith.constant 0 : index
    %2 = vector.load %arg2[%c0_1, %c0_2] : memref<128x128xf32, #tpu.memory_space<vmem>>, vector<128x128xf32>
    %cst = arith.constant dense<0.000000e+00> : vector<16x128xf32>
    %3 = tpu.matmul %1, %2, %cst {dimension_numbers = #tpu.dot_dimension_numbers<[1], [1], [0], [0], [0, 0, 1, 0], [], []>} : vector<16x128xf32>, vector<128x128xf32>, vector<16x128xf32> -> vector<16x128xf32>
    %c0_3 = arith.constant 0 : index
    %c0_4 = arith.constant 0 : index
    %4 = vector.load %arg3[%c0_3, %c0_4] : memref<1x128xf32, #tpu.memory_space<vmem>>, vector<1x128xf32>
    %5 = vector.broadcast %4 : vector<1x128xf32> to vector<16x128xf32>
    %6 = arith.addf %3, %5 : vector<16x128xf32>
    %c0_5 = arith.constant 0 : index
    %c0_6 = arith.constant 0 : index
    %7 = vector.load %arg4[%c0_5, %c0_6] : memref<16x128xf32, #tpu.memory_space<vmem>>, vector<16x128xf32>
    tpu.vector_store %arg4[%c0_5, %c0_6], %6 {strides = array<i32>} : memref<16x128xf32, #tpu.memory_space<vmem>>, vector<16x128xf32>,
    return
  }
  func.func @transform_0(%arg0: i32) -> (i32, i32) {
    %c0_i32 = arith.constant 0 : i32
    %c0_i32_0 = arith.constant 0 : i32
    return %arg0, %c0_i32 : i32, i32
  }
  func.func @transform_1(%arg0: i32) -> (i32, i32) {
    %c0_i32 = arith.constant 0 : i32
    %c0_i32_0 = arith.constant 0 : i32
    %c0_i32_1 = arith.constant 0 : i32
    return %c0_i32, %c0_i32_0 : i32, i32
  }
  func.func @transform_2(%arg0: i32) -> (i32, i32) {
    %c0_i32 = arith.constant 0 : i32
    %c0_i32_0 = arith.constant 0 : i32
    %c0_i32_1 = arith.constant 0 : i32
    return %c0_i32, %c0_i32_0 : i32, i32
  }
  func.func @transform_3(%arg0: i32) -> (i32, i32) {
    %c0_i32 = arith.constant 0 : i32
    %c0_i32_0 = arith.constant 0 : i32
    return %arg0, %c0_i32 : i32, i32
  }
}

</mosaic_0001>

<bundles_post_ra>
// kernel: tpu_custom_call.1
= control target key start
LH: loop header
LB: loop body
LE: loop exit
PB: predicated region body
PF: predicated region fallthrough
CT: control target
= control target key end

     0   :  { %8 = vsyncpa [#allocation3], 0  ;;  %s405_s0 = inlined_call_operand.hbm [shape: f32[16,128], index: 0, kind: input, shape index: {}]   ;;  %s406_s1 = inlined_call_operand.hbm [shape: f32[128,128], index: 1, kind: input, shape index: {}]   ;;  %s407_s2 = inlined_call_operand.vmem [shape: f32[1,128], index: 2, kind: input, shape index: {}]   ;;  %s408_s3 = inlined_call_operand.hbm [shape: f32[16,128], index: 3, kind: output, shape index: {}]  }
   0x1   :  { %9 = vsyncpa [#allocation6], 0 }
   0x2   :  { %10 = vsyncpa [#allocation4], 0  ;;  %s332_s12 = smov [#allocation2]   ;;  %s260_s16 = scalar_lea.hbm %s405_s0, 256 }
   0x3   :  { %s16_s13 = sshll.u32 %s332_s12, 4  ;;  %p261_p0 = scmp.ne.s32.totalorder %s405_s0, %s260_s16  ;;  %s17_s13 = int_to_ptr.vmem [resolvable:$true] %s16_s13 }
   0x4   :  { %p264_p1 = scmp.lt.u32.totalorder %s260_s16, %s405_s0 }
   0x6   :  { %p266_p2 = pnand %p264_p1, %p261_p0 }
   0x8   :  { %269 = shalt.err (!%p266_p2)
}
   0x9   :  { %s270_s21 = scalar_lea.vmem %s17_s13, 256  ;;  %p275_p4 = scmp.lt.s32.totalorder %s17_s13, %s17_s13 }
   0xa   :  { %p271_p3 = scmp.ne.s32.totalorder %s17_s13, %s270_s21  ;;  %p276_p5 = scmp.lt.s32.totalorder %s270_s21, %s270_s21 }
   0xc   :  { %p277_p6 = por %p276_p5, %p275_p4 }
   0xe   :  { %p278_p7 = pnand %p277_p6, %p271_p3 }
  0x10   :  { %281 = shalt.err (!%p278_p7)
}
  0x11   :  { %s333_s22 = smov 128   ;;  %s334_s23 = smov 8  }
  0x12   :  { %22 = dma.hbm_to_vmem [thread:$0]  %s405_s0, 256, %s17_s13, [#allocation3], %s333_s22, %s333_s22, %s334_s23  }
  0x13   :  { %s335_s26 = smov [#allocation5]   ;;  %s282_s30 = scalar_lea.hbm %s406_s1, 2048 }
  0x14   :  { %s28_s27 = sshll.u32 %s335_s26, 4  ;;  %p283_p8 = scmp.ne.s32.totalorder %s406_s1, %s282_s30  ;;  %s29_s27 = int_to_ptr.vmem [resolvable:$true] %s28_s27 }
  0x15   :  { %p286_p9 = scmp.lt.u32.totalorder %s282_s30, %s406_s1 }
  0x17   :  { %p288_p10 = pnand %p286_p9, %p283_p8 }
  0x19   :  { %291 = shalt.err (!%p288_p10)
}
  0x1a   :  { %s292_s8 = scalar_lea.vmem %s29_s27, 2048  ;;  %p297_p12 = scmp.lt.s32.totalorder %s29_s27, %s29_s27 }
  0x1b   :  { %p293_p11 = scmp.ne.s32.totalorder %s29_s27, %s292_s8  ;;  %p298_p13 = scmp.lt.s32.totalorder %s292_s8, %s292_s8 }
  0x1d   :  { %p299_p0 = por %p298_p13, %p297_p12 }
  0x1f   :  { %p300_p1 = pnand %p299_p0, %p293_p11 }
  0x21   :  { %303 = shalt.err (!%p300_p1)
}
  0x22   :  { %34 = dma.hbm_to_vmem [thread:$0]  %s406_s1, 2048, %s29_s27, [#allocation6], %s333_s22, %s333_s22, %s334_s23  }
  0x23   :  { %326 = dma.done.wait [#allocation3], 256  }
  0x24   :  { %327 = vsyncadd [#allocation3], 4294967040 }
  0x25   :  { %328 = dma.done.wait [#allocation6], 2048  }
  0x26   :  { %329 = vsyncadd [#allocation6], 4294965248  ;;  %v47_v0 = vld [vmem:[#allocation5] sm:$0xff]  ;;  %v48_v1 = vld [vmem:[#allocation5 + $0x8] sm:$0xff]  ;;  %s336_s11 = smov [#allocation7]  }
  0x27   :  { %v49_v2 = vld [vmem:[#allocation5 + $0x10] sm:$0xff]  ;;  %v219_v3 = vpack.c.bf16 %v48_v1, %v47_v0  ;;  %v50_v4 = vld [vmem:[#allocation5 + $0x18] sm:$0xff]  ;;  %v51_v7 = vld [vmem:[#allocation5 + $0x20] sm:$0xff]  ;;  %s152_s12 = sshll.u32 %s336_s11, 4  ;;  %s153_s12 = int_to_ptr.vmem [resolvable:$true] %s152_s12 }
  0x28   :  { %v223_v5 = vpack.c.bf16 %v50_v4, %v49_v2  ;;  %v43_v6 = vld [vmem:[#allocation2] sm:$0xff]  ;;  %v52_v8 = vld [vmem:[#allocation5 + $0x28] sm:$0xff]  ;;  %v54_v11 = vld [vmem:[#allocation5 + $0x38] sm:$0xff]  ;;  %s304_s13 = scalar_lea.vmem %s153_s12, 256  ;;  %p309_p3 = scmp.lt.s32.totalorder %s153_s12, %s153_s12 }
  0x29   :  { %220 = vmatprep.subr.bf16.mxu0 %v219_v3  ;;  %256 = vtanh.f32 %v43_v6  ;;  %v227_v9 = vpack.c.bf16 %v52_v8, %v51_v7  ;;  %v53_v10 = vld [vmem:[#allocation5 + $0x30] sm:$0xff]  ;;  %v55_v14 = vld [vmem:[#allocation5 + $0x40] sm:$0xff]  ;;  %v56_v15 = vld [vmem:[#allocation5 + $0x48] sm:$0xff]  ;;  %p305_p2 = scmp.ne.s32.totalorder %s153_s12, %s304_s13  ;;  %p310_p4 = scmp.lt.s32.totalorder %s304_s13, %s304_s13 }
  0x2a   :  { %222 = vmatpush3.bf16.xpose.msra.mxu0 %v219_v3  ;;  %v231_v13 = vpack.c.bf16 %v54_v11, %v53_v10  ;;  %v235_v16 = vpack.c.bf16 %v56_v15, %v55_v14  ;;  %v57_v17 = vld [vmem:[#allocation5 + $0x50] sm:$0xff]  ;;  %v58_v18 = vld [vmem:[#allocation5 + $0x58] sm:$0xff]  ;;  %v59_v20 = vld [vmem:[#allocation5 + $0x60] sm:$0xff] }
  0x2b   :  { %224 = vmatprep.subr.bf16.mxu0 %v223_v5  ;;  %v239_v19 = vpack.c.bf16 %v58_v18, %v57_v17  ;;  %v60_v21 = vld [vmem:[#allocation5 + $0x68] sm:$0xff]  ;;  %v61_v23 = vld [vmem:[#allocation5 + $0x70] sm:$0xff]  ;;  %v62_v24 = vld [vmem:[#allocation5 + $0x78] sm:$0xff]  ;;  %p311_p5 = por %p310_p4, %p309_p3 }
  0x2c   :  { %v243_v22 = vpack.c.bf16 %v60_v21, %v59_v20  ;;  %v247_v25 = vpack.c.bf16 %v62_v24, %v61_v23  ;;  %v44_v26 = vld [vmem:[#allocation2 + $0x8] sm:$0xff]  ;;  %v165_v28 = vld [vmem:[%s407_s2] ss:$0 sm:$0xff] }
  0x2d   :  { %258 = vtanh.f32 %v44_v26  ;;  %p312_p6 = pnand %p311_p5, %p305_p2 }
  0x32   :  { %226 = vmatpush3.bf16.xpose.msra.mxu0 %v223_v5 }
  0x33   :  { %228 = vmatprep.subr.bf16.mxu0 %v227_v9  ;;  %v257_v12 = vpop.eup %256 }
  0x34   :  { %216 = vmatprep.mubr.f32.mxu0 %v257_v12 }
  0x37   :  { %v259_v27 = vpop.eup %258 }
  0x3a   :  { %230 = vmatpush3.bf16.xpose.msra.mxu0 %v227_v9 }
  0x3b   :  { %232 = vmatprep.subr.bf16.mxu0 %v231_v13 }
  0x42   :  { %234 = vmatpush3.bf16.xpose.msra.mxu0 %v231_v13 }
  0x43   :  { %236 = vmatprep.subr.bf16.mxu0 %v235_v16 }
  0x4a   :  { %238 = vmatpush3.bf16.xpose.msra.mxu0 %v235_v16 }
  0x4b   :  { %240 = vmatprep.subr.bf16.mxu0 %v239_v19 }
  0x52   :  { %242 = vmatpush3.bf16.xpose.msra.mxu0 %v239_v19 }
  0x53   :  { %244 = vmatprep.subr.bf16.mxu0 %v243_v22 }
  0x5a   :  { %246 = vmatpush3.bf16.xpose.msra.mxu0 %v243_v22 }
  0x5b   :  { %248 = vmatprep.subr.bf16.mxu0 %v247_v25 }
  0x62   :  { %250 = vmatpush3.bf16.xpose.msra.mxu0 %v247_v25 }
  0x69   :  { %217 = vmatmul.mubr.f32.vlgmr.msra.gmra.mrb[0].mxu0 %v259_v27 }
 0x13c   :  { %v218_v29 = vpop.f32.mrb[0].mxu0 }
 0x13d   :  { %v142_v30 = vadd.f32 %v218_v29, %v165_v28  ;;  %v136_v31 = vpop.f32.mrb[1].mxu0 }
 0x13e   :  { %v137_v32 = vadd.f32 %v165_v28, %v136_v31 }
 0x13f   :  { %146 = vst [vmem:[#allocation7 + $0x8] sm:$0xff] %v142_v30 }
 0x140   :  { %145 = vst [vmem:[#allocation7] sm:$0xff] %v137_v32 }
 0x141   :  { %315 = shalt.err (!%p312_p6)
}
 0x142   :  { %s316_s2 = scalar_lea.hbm %s408_s3, 256 }
 0x143   :  { %p317_p7 = scmp.ne.s32.totalorder %s408_s3, %s316_s2  ;;  %p320_p8 = scmp.lt.u32.totalorder %s316_s2, %s408_s3 }
 0x145   :  { %p322_p9 = pnand %p320_p8, %p317_p7 }
 0x147   :  { %325 = shalt.err (!%p322_p9)
}
 0x148   :  { %158 = dma.vmem_to_hbm [thread:$0]  %s153_s12, 256, %s408_s3, [#allocation4], %s333_s22, %s333_s22, %s334_s23  }
 0x149   :  { %330 = dma.done.wait [#allocation4], 256  }
 0x14a   :  { %331 = vsyncadd [#allocation4], 4294967040 }
 0x14b   :  { %162 = vsyncpa [#allocation3], 1 }
 0x14c   :  { %163 = vsyncpa [#allocation6], 1 }
 0x14d   :  { %164 = vsyncpa [#allocation4], 1 }

</bundles_post_ra>
